<compile_context>
chip_gen: v7x
topology: tpu7x:2x2x1
jax: 0.10.0
libtpu: 0.0.40
codegen_flags: <defaults>
</compile_context>

<pallas_src>
import functools

import jax
import jax.numpy as jnp
from jax.experimental import pallas as pl
from jax.experimental.pallas import tpu as pltpu


def _gelu_tanh(x):
    # tanh-approximate GELU (Mosaic-safe: tanh/mul/add only).
    c = 0.7978845608028654  # sqrt(2/pi)
    return 0.5 * x * (1.0 + jnp.tanh(c * (x + 0.044715 * x * x * x)))


def _gdfn_kernel(W, HW, LPAD, Ch, tap_dtype,
                 x_ref, win_ref, dw_ref, wout_ref, mask_ref, o_ref, ypad_ref):
    """Fused GDFN for one batch element.

    x_ref    : (1, C, HW)   f32        unpadded flat-spatial input
    win_ref  : (C2, C)      bf16       project_in 1x1 weights
    dw_ref   : (9, C2, HW)  tap_dtype  depthwise 3x3 weights, lane-dense (tap = 3*ky+kx)
    wout_ref : (C, Ch)      bf16       project_out 1x1 weights
    mask_ref : (2, HWP)     tap_dtype  W-boundary source masks (padded layout)
    o_ref    : (1, C, HW)   f32
    ypad_ref : (C2, HWP)    tap_dtype  VMEM scratch: zero-padded project_in output
    """
    C2 = dw_ref.shape[1]

    # project_in on the MXU: bf16 operands (cast in-register), f32 accumulation.
    xb = x_ref[0].astype(jnp.bfloat16)                          # (C, HW)
    y = jnp.dot(win_ref[...], xb,
                preferred_element_type=jnp.float32)             # (C2, HW) f32
    y = y.astype(tap_dtype)

    # Zero-padded flat buffer: LPAD zero lanes each side supply the H-halo rows
    # for the ky = +-1 taps.  Pads are re-zeroed every step (cheap, and safe
    # under megacore "parallel" grid sharding).
    zpad = jnp.zeros((C2, LPAD), tap_dtype)
    ypad_ref[:, :LPAD] = zpad
    ypad_ref[:, LPAD + HW:] = zpad
    ypad_ref[:, LPAD:LPAD + HW] = y
    ypad = ypad_ref[...]                                        # (C2, HWP)

    # Two source-masked copies kill the per-tap W-boundary mask multiplies.
    m = mask_ref[...]
    y_m1 = ypad * m[0:1, :]   # col W-1 zeroed -> source for kx-offset -1 taps
    y_p1 = ypad * m[1:2, :]   # col 0   zeroed -> source for kx-offset +1 taps
    srcs = (y_m1, ypad, y_p1)

    dwb = dw_ref[...]                                           # (9, C2, HW)

    # Depthwise 3x3: accumulator initialised with the centre tap, then eight
    # statically shifted lane slices of the padded buffer; f32 accumulation.
    acc = (dwb[4] * y).astype(jnp.float32)                      # centre tap
    for ky in range(3):
        for kx in range(3):
            if ky == 1 and kx == 1:
                continue
            start = LPAD + (ky - 1) * W + (kx - 1)
            acc = acc + dwb[3 * ky + kx] * srcs[kx][:, start:start + HW]

    x1 = acc[:Ch, :]                                            # gate branch
    x2 = acc[Ch:, :]
    g = _gelu_tanh(x1) * x2                                     # (Ch, HW) f32

    out = jnp.dot(wout_ref[...], g.astype(jnp.bfloat16),
                  preferred_element_type=jnp.float32)           # (C, HW) f32
    o_ref[0] = out.astype(o_ref.dtype)


def gdfn_forward(x, w_in, w_dw, w_out):
    """GDFN forward. x: (N, C, H, W) f32. w_in: (2*hid, C), w_dw: (2*hid, 3, 3),
    w_out: (C, hid). Returns (N, C, H, W) f32."""
    N, C, H, W = x.shape
    C2 = w_in.shape[0]
    Ch = C2 // 2
    HW = H * W
    LPAD = ((W + 1 + 127) // 128) * 128       # lane-aligned halo pad (>= W+1)
    HWP = HW + 2 * LPAD

    # bf16 tap math only on generations with a bf16 VPU (v6e/v7x); f32 elsewhere.
    kind = jax.devices()[0].device_kind.lower()
    tap_dtype = (jnp.bfloat16
                 if any(t in kind for t in ("v6", "v7", "7x"))
                 else jnp.float32)
    tap_bytes = jnp.dtype(tap_dtype).itemsize

    # Contiguous reshape only (no pad, no cast): no extra HBM pass over x.
    x_flat = x.reshape(N, C, HW)

    w_in_b = w_in.astype(jnp.bfloat16)                          # (C2, C)
    w_out_b = w_out.astype(jnp.bfloat16)                        # (C, Ch)
    # Depthwise weights pre-broadcast to lane-dense (9, C2, HW); DMA'd once
    # (constant index_map).  For production spatial tiles, splat once in-kernel.
    dw_b = jnp.broadcast_to(
        w_dw.reshape(C2, 9).T[:, :, None], (9, C2, HW)).astype(tap_dtype)

    # W-boundary source masks, laid out in the padded flat coordinate system.
    col = jnp.arange(HW, dtype=jnp.int32) % W
    masks = jnp.stack([(col != W - 1), (col != 0)]).astype(tap_dtype)   # (2, HW)
    masks = jnp.pad(masks, ((0, 0), (LPAD, LPAD)))                      # (2, HWP)

    cost = pl.CostEstimate(
        flops=int(2 * N * HW * (C * C2 + 9 * C2 + Ch * C + 5 * Ch)),
        transcendentals=int(N * HW * Ch),
        bytes_accessed=int(2 * N * C * HW * 4            # x in + out, f32
                           + w_in_b.size * 2 + w_out_b.size * 2
                           + dw_b.size * tap_bytes + masks.size * tap_bytes),
    )

    kernel = functools.partial(_gdfn_kernel, W, HW, LPAD, Ch, tap_dtype)
    out_flat = pl.pallas_call(
        kernel,
        out_shape=jax.ShapeDtypeStruct((N, C, HW), x.dtype),
        grid=(N,),
        in_specs=[
            pl.BlockSpec((1, C, HW), lambda n: (n, 0, 0)),
            pl.BlockSpec((C2, C), lambda n: (0, 0)),
            pl.BlockSpec((9, C2, HW), lambda n: (0, 0, 0)),
            pl.BlockSpec((C, Ch), lambda n: (0, 0)),
            pl.BlockSpec((2, HWP), lambda n: (0, 0)),
        ],
        out_specs=pl.BlockSpec((1, C, HW), lambda n: (n, 0, 0)),
        scratch_shapes=[pltpu.VMEM((C2, HWP), tap_dtype)],
        compiler_params=pltpu.CompilerParams(
            dimension_semantics=("parallel",),
            vmem_limit_bytes=32 * 1024 * 1024),
        cost_estimate=cost,
    )(x_flat, w_in_b, dw_b, w_out_b, masks)

    return out_flat.reshape(N, C, H, W)


if __name__ == "__main__":
    key = jax.random.PRNGKey(0)
    k_x, k1, k2, k3 = jax.random.split(key, 4)

    N, C, H, W = 2, 4, 16, 16
    expansion_factor = 2
    Ch = int(C * expansion_factor)      # hidden_channels = 8
    C2 = 2 * Ch                         # 16

    x = jax.random.normal(k_x, (N, C, H, W), dtype=jnp.float32)

    def uinit(k, shape, fan_in):
        b = 1.0 / (fan_in ** 0.5)
        return jax.random.uniform(k, shape, jnp.float32, -b, b)

    w_in = uinit(k1, (C2, C), C)        # Conv2d(C, 2*hid, 1, bias=False)
    w_dw = uinit(k2, (C2, 3, 3), 9)     # Conv2d(2*hid, 2*hid, 3, groups=2*hid)
    w_out = uinit(k3, (C, Ch), Ch)      # Conv2d(hid, C, 1, bias=False)

    out = jax.block_until_ready(gdfn_forward(x, w_in, w_dw, w_out))
    assert out.shape == (N, C, H, W), out.shape

    # Pure-JAX f32 reference matching the PyTorch GDFN forward (exact GELU).
    y = jnp.einsum('oc,nchw->nohw', w_in, x)
    z = jax.lax.conv_general_dilated(
        y, w_dw.reshape(C2, 1, 3, 3), window_strides=(1, 1),
        padding=((1, 1), (1, 1)),
        dimension_numbers=("NCHW", "OIHW", "NCHW"),
        feature_group_count=C2)
    z1, z2 = z[:, :Ch], z[:, Ch:]
    ref = jnp.einsum('oc,nchw->nohw', w_out,
                     jax.nn.gelu(z1, approximate=False) * z2)

    # bf16 MXU operands (+ optional bf16 tap math) + tanh-GELU -> relaxed tol.
    assert jnp.allclose(out, ref, atol=2e-2, rtol=2e-2), \
        float(jnp.max(jnp.abs(out - ref)))
    print("KERNEL_OK")
</pallas_src>

<mosaic_0001>
module attributes {stable_mosaic.version = 11 : i64} {
  func.func @_gdfn_kernel(%arg0: i32, %arg1: memref<1x4x256xf32, #tpu.memory_space<vmem>>, %arg2: memref<16x4xbf16, #tpu.memory_space<vmem>>, %arg3: memref<9x16x256xf32, #tpu.memory_space<vmem>>, %arg4: memref<4x8xbf16, #tpu.memory_space<vmem>>, %arg5: memref<2x512xf32, #tpu.memory_space<vmem>>, %arg6: memref<1x4x256xf32, #tpu.memory_space<vmem>>, %arg7: memref<16x512xf32, #tpu.memory_space<vmem>>) attributes {dimension_semantics = [#tpu.dimension_semantics<parallel>], iteration_bounds = array<i64: 2>, scalar_prefetch = 0 : i64, scratch_operands = 1 : i64, tpu.core_type = #tpu.core_type<tc>, window_params = [{transform_indices = @transform_0, window_bounds = array<i64: 1, 4, 256>}, {pipeline_mode = #tpu.pipeline_mode<synchronous>, transform_indices = @transform_1, window_bounds = array<i64: 16, 4>}, {pipeline_mode = #tpu.pipeline_mode<synchronous>, transform_indices = @transform_2, window_bounds = array<i64: 9, 16, 256>}, {pipeline_mode = #tpu.pipeline_mode<synchronous>, transform_indices = @transform_3, window_bounds = array<i64: 4, 8>}, {pipeline_mode = #tpu.pipeline_mode<synchronous>, transform_indices = @transform_4, window_bounds = array<i64: 2, 512>}, {transform_indices = @transform_5, window_bounds = array<i64: 1, 4, 256>}]} {
    %c0 = arith.constant 0 : index
    %c0_0 = arith.constant 0 : index
    %c0_1 = arith.constant 0 : index
    %0 = vector.load %arg1[%c0, %c0_0, %c0_1] : memref<1x4x256xf32, #tpu.memory_space<vmem>>, vector<1x4x256xf32>
    %1 = vector.shape_cast %0 : vector<1x4x256xf32> to vector<4x256xf32>
    %2 = arith.truncf %1 : vector<4x256xf32> to vector<4x256xbf16>
    %c0_2 = arith.constant 0 : index
    %c0_3 = arith.constant 0 : index
    %3 = vector.load %arg2[%c0_2, %c0_3] : memref<16x4xbf16, #tpu.memory_space<vmem>>, vector<16x4xbf16>
    %cst = arith.constant dense<0.000000e+00> : vector<16x256xf32>
    %4 = tpu.matmul %3, %2, %cst {dimension_numbers = #tpu.dot_dimension_numbers<[1], [0], [0], [1], [0, 0, 1, 1], [], []>} : vector<16x4xbf16>, vector<4x256xbf16>, vector<16x256xf32> -> vector<16x256xf32>
    %cst_4 = arith.constant 0.000000e+00 : f32
    %5 = vector.broadcast %cst_4 : f32 to vector<16x128xf32>
    %c0_5 = arith.constant 0 : index
    %c0_6 = arith.constant 0 : index
    %6 = vector.load %arg7[%c0_5, %c0_6] : memref<16x512xf32, #tpu.memory_space<vmem>>, vector<16x128xf32>
    tpu.vector_store %arg7[%c0_5, %c0_6], %5 {strides = array<i32>} : memref<16x512xf32, #tpu.memory_space<vmem>>, vector<16x128xf32>,
    %c0_7 = arith.constant 0 : index
    %c384 = arith.constant 384 : index
    %7 = vector.load %arg7[%c0_7, %c384] : memref<16x512xf32, #tpu.memory_space<vmem>>, vector<16x128xf32>
    tpu.vector_store %arg7[%c0_7, %c384], %5 {strides = array<i32>} : memref<16x512xf32, #tpu.memory_space<vmem>>, vector<16x128xf32>,
    %c0_8 = arith.constant 0 : index
    %c128 = arith.constant 128 : index
    %8 = vector.load %arg7[%c0_8, %c128] : memref<16x512xf32, #tpu.memory_space<vmem>>, vector<16x256xf32>
    tpu.vector_store %arg7[%c0_8, %c128], %4 {strides = array<i32>} : memref<16x512xf32, #tpu.memory_space<vmem>>, vector<16x256xf32>,
    %c0_9 = arith.constant 0 : index
    %c0_10 = arith.constant 0 : index
    %9 = vector.load %arg7[%c0_9, %c0_10] : memref<16x512xf32, #tpu.memory_space<vmem>>, vector<16x512xf32>
    %c0_11 = arith.constant 0 : index
    %c0_12 = arith.constant 0 : index
    %10 = vector.load %arg5[%c0_11, %c0_12] : memref<2x512xf32, #tpu.memory_space<vmem>>, vector<2x512xf32>
    %11 = vector.extract_strided_slice %10 {offsets = [0, 0], sizes = [1, 512], strides = [1, 1]} : vector<2x512xf32> to vector<1x512xf32>
    %12 = vector.broadcast %11 : vector<1x512xf32> to vector<16x512xf32>
    %13 = arith.mulf %9, %12 : vector<16x512xf32>
    %14 = vector.extract_strided_slice %10 {offsets = [1, 0], sizes = [1, 512], strides = [1, 1]} : vector<2x512xf32> to vector<1x512xf32>
    %15 = vector.broadcast %14 : vector<1x512xf32> to vector<16x512xf32>
    %16 = arith.mulf %9, %15 : vector<16x512xf32>
    %c0_13 = arith.constant 0 : index
    %c0_14 = arith.constant 0 : index
    %c0_15 = arith.constant 0 : index
    %17 = vector.load %arg3[%c0_13, %c0_14, %c0_15] : memref<9x16x256xf32, #tpu.memory_space<vmem>>, vector<9x16x256xf32>
    %18 = vector.extract_strided_slice %17 {offsets = [4, 0, 0], sizes = [1, 16, 256], strides = [1, 1, 1]} : vector<9x16x256xf32> to vector<1x16x256xf32>
    %19 = vector.shape_cast %18 : vector<1x16x256xf32> to vector<16x256xf32>
    %20 = arith.mulf %19, %4 : vector<16x256xf32>
    %21 = vector.extract_strided_slice %17 {offsets = [0, 0, 0], sizes = [1, 16, 256], strides = [1, 1, 1]} : vector<9x16x256xf32> to vector<1x16x256xf32>
    %22 = vector.shape_cast %21 : vector<1x16x256xf32> to vector<16x256xf32>
    %23 = vector.extract_strided_slice %13 {offsets = [0, 111], sizes = [16, 256], strides = [1, 1]} : vector<16x512xf32> to vector<16x256xf32>
    %24 = arith.mulf %22, %23 : vector<16x256xf32>
    %25 = arith.addf %20, %24 : vector<16x256xf32>
    %26 = vector.extract_strided_slice %17 {offsets = [1, 0, 0], sizes = [1, 16, 256], strides = [1, 1, 1]} : vector<9x16x256xf32> to vector<1x16x256xf32>
    %27 = vector.shape_cast %26 : vector<1x16x256xf32> to vector<16x256xf32>
    %28 = vector.extract_strided_slice %9 {offsets = [0, 112], sizes = [16, 256], strides = [1, 1]} : vector<16x512xf32> to vector<16x256xf32>
    %29 = arith.mulf %27, %28 : vector<16x256xf32>
    %30 = arith.addf %25, %29 : vector<16x256xf32>
    %31 = vector.extract_strided_slice %17 {offsets = [2, 0, 0], sizes = [1, 16, 256], strides = [1, 1, 1]} : vector<9x16x256xf32> to vector<1x16x256xf32>
    %32 = vector.shape_cast %31 : vector<1x16x256xf32> to vector<16x256xf32>
    %33 = vector.extract_strided_slice %16 {offsets = [0, 113], sizes = [16, 256], strides = [1, 1]} : vector<16x512xf32> to vector<16x256xf32>
    %34 = arith.mulf %32, %33 : vector<16x256xf32>
    %35 = arith.addf %30, %34 : vector<16x256xf32>
    %36 = vector.extract_strided_slice %17 {offsets = [3, 0, 0], sizes = [1, 16, 256], strides = [1, 1, 1]} : vector<9x16x256xf32> to vector<1x16x256xf32>
    %37 = vector.shape_cast %36 : vector<1x16x256xf32> to vector<16x256xf32>
    %38 = vector.extract_strided_slice %13 {offsets = [0, 127], sizes = [16, 256], strides = [1, 1]} : vector<16x512xf32> to vector<16x256xf32>
    %39 = arith.mulf %37, %38 : vector<16x256xf32>
    %40 = arith.addf %35, %39 : vector<16x256xf32>
    %41 = vector.extract_strided_slice %17 {offsets = [5, 0, 0], sizes = [1, 16, 256], strides = [1, 1, 1]} : vector<9x16x256xf32> to vector<1x16x256xf32>
    %42 = vector.shape_cast %41 : vector<1x16x256xf32> to vector<16x256xf32>
    %43 = vector.extract_strided_slice %16 {offsets = [0, 129], sizes = [16, 256], strides = [1, 1]} : vector<16x512xf32> to vector<16x256xf32>
    %44 = arith.mulf %42, %43 : vector<16x256xf32>
    %45 = arith.addf %40, %44 : vector<16x256xf32>
    %46 = vector.extract_strided_slice %17 {offsets = [6, 0, 0], sizes = [1, 16, 256], strides = [1, 1, 1]} : vector<9x16x256xf32> to vector<1x16x256xf32>
    %47 = vector.shape_cast %46 : vector<1x16x256xf32> to vector<16x256xf32>
    %48 = vector.extract_strided_slice %13 {offsets = [0, 143], sizes = [16, 256], strides = [1, 1]} : vector<16x512xf32> to vector<16x256xf32>
    %49 = arith.mulf %47, %48 : vector<16x256xf32>
    %50 = arith.addf %45, %49 : vector<16x256xf32>
    %51 = vector.extract_strided_slice %17 {offsets = [7, 0, 0], sizes = [1, 16, 256], strides = [1, 1, 1]} : vector<9x16x256xf32> to vector<1x16x256xf32>
    %52 = vector.shape_cast %51 : vector<1x16x256xf32> to vector<16x256xf32>
    %53 = vector.extract_strided_slice %9 {offsets = [0, 144], sizes = [16, 256], strides = [1, 1]} : vector<16x512xf32> to vector<16x256xf32>
    %54 = arith.mulf %52, %53 : vector<16x256xf32>
    %55 = arith.addf %50, %54 : vector<16x256xf32>
    %56 = vector.extract_strided_slice %17 {offsets = [8, 0, 0], sizes = [1, 16, 256], strides = [1, 1, 1]} : vector<9x16x256xf32> to vector<1x16x256xf32>
    %57 = vector.shape_cast %56 : vector<1x16x256xf32> to vector<16x256xf32>
    %58 = vector.extract_strided_slice %16 {offsets = [0, 145], sizes = [16, 256], strides = [1, 1]} : vector<16x512xf32> to vector<16x256xf32>
    %59 = arith.mulf %57, %58 : vector<16x256xf32>
    %60 = arith.addf %55, %59 : vector<16x256xf32>
    %61 = vector.extract_strided_slice %60 {offsets = [0, 0], sizes = [8, 256], strides = [1, 1]} : vector<16x256xf32> to vector<8x256xf32>
    %62 = vector.extract_strided_slice %60 {offsets = [8, 0], sizes = [8, 256], strides = [1, 1]} : vector<16x256xf32> to vector<8x256xf32>
    %cst_16 = arith.constant 5.000000e-01 : f32
    %63 = vector.broadcast %cst_16 : f32 to vector<8x256xf32>
    %64 = arith.mulf %63, %61 : vector<8x256xf32>
    %cst_17 = arith.constant 4.471500e-02 : f32
    %65 = vector.broadcast %cst_17 : f32 to vector<8x256xf32>
    %66 = arith.mulf %65, %61 : vector<8x256xf32>
    %67 = arith.mulf %66, %61 : vector<8x256xf32>
    %68 = arith.mulf %67, %61 : vector<8x256xf32>
    %69 = arith.addf %61, %68 : vector<8x256xf32>
    %cst_18 = arith.constant 0.797884583 : f32
    %70 = vector.broadcast %cst_18 : f32 to vector<8x256xf32>
    %71 = arith.mulf %70, %69 : vector<8x256xf32>
    %72 = math.tanh %71 : vector<8x256xf32>
    %cst_19 = arith.constant 1.000000e+00 : f32
    %73 = vector.broadcast %cst_19 : f32 to vector<8x256xf32>
    %74 = arith.addf %73, %72 : vector<8x256xf32>
    %75 = arith.mulf %64, %74 : vector<8x256xf32>
    %76 = arith.mulf %75, %62 : vector<8x256xf32>
    %c0_20 = arith.constant 0 : index
    %c0_21 = arith.constant 0 : index
    %77 = vector.load %arg4[%c0_20, %c0_21] : memref<4x8xbf16, #tpu.memory_space<vmem>>, vector<4x8xbf16>
    %78 = arith.truncf %76 : vector<8x256xf32> to vector<8x256xbf16>
    %cst_22 = arith.constant dense<0.000000e+00> : vector<4x256xf32>
    %79 = tpu.matmul %77, %78, %cst_22 {dimension_numbers = #tpu.dot_dimension_numbers<[1], [0], [0], [1], [0, 0, 1, 1], [], []>} : vector<4x8xbf16>, vector<8x256xbf16>, vector<4x256xf32> -> vector<4x256xf32>
    %c0_23 = arith.constant 0 : index
    %c0_24 = arith.constant 0 : index
    %c0_25 = arith.constant 0 : index
    %80 = vector.load %arg6[%c0_23, %c0_24, %c0_25] : memref<1x4x256xf32, #tpu.memory_space<vmem>>, vector<1x4x256xf32>
    %81 = vector.shape_cast %80 : vector<1x4x256xf32> to vector<4x256xf32>
    %82 = vector.shape_cast %79 : vector<4x256xf32> to vector<1x4x256xf32>
    tpu.vector_store %arg6[%c0_23, %c0_24, %c0_25], %82 {strides = array<i32>} : memref<1x4x256xf32, #tpu.memory_space<vmem>>, vector<1x4x256xf32>,
    return
  }
  func.func @transform_0(%arg0: i32) -> (i32, i32, i32) {
    %c0_i32 = arith.constant 0 : i32
    %c0_i32_0 = arith.constant 0 : i32
    %c0_i32_1 = arith.constant 0 : i32
    return %arg0, %c0_i32, %c0_i32_0 : i32, i32, i32
  }
  func.func @transform_1(%arg0: i32) -> (i32, i32) {
    %c0_i32 = arith.constant 0 : i32
    %c0_i32_0 = arith.constant 0 : i32
    %c0_i32_1 = arith.constant 0 : i32
    return %c0_i32, %c0_i32_0 : i32, i32
  }
  func.func @transform_2(%arg0: i32) -> (i32, i32, i32) {
    %c0_i32 = arith.constant 0 : i32
    %c0_i32_0 = arith.constant 0 : i32
    %c0_i32_1 = arith.constant 0 : i32
    %c0_i32_2 = arith.constant 0 : i32
    return %c0_i32, %c0_i32_0, %c0_i32_1 : i32, i32, i32
  }
  func.func @transform_3(%arg0: i32) -> (i32, i32) {
    %c0_i32 = arith.constant 0 : i32
    %c0_i32_0 = arith.constant 0 : i32
    %c0_i32_1 = arith.constant 0 : i32
    return %c0_i32, %c0_i32_0 : i32, i32
  }
  func.func @transform_4(%arg0: i32) -> (i32, i32) {
    %c0_i32 = arith.constant 0 : i32
    %c0_i32_0 = arith.constant 0 : i32
    %c0_i32_1 = arith.constant 0 : i32
    return %c0_i32, %c0_i32_0 : i32, i32
  }
  func.func @transform_5(%arg0: i32) -> (i32, i32, i32) {
    %c0_i32 = arith.constant 0 : i32
    %c0_i32_0 = arith.constant 0 : i32
    %c0_i32_1 = arith.constant 0 : i32
    return %arg0, %c0_i32, %c0_i32_0 : i32, i32, i32
  }
}

</mosaic_0001>

<bundles_post_ra>
// kernel: tpu_custom_call.1
= control target key start
LH: loop header
LB: loop body
LE: loop exit
PB: predicated region body
PF: predicated region fallthrough
CT: control target
= control target key end

     0   :  { %10 = vsyncpa [#allocation4], 0  ;;  %s1597_s0 = inlined_call_operand.hbm [shape: f32[2,4,256], index: 0, kind: input, shape index: {}]   ;;  %s1598_s1 = inlined_call_operand.vmem [shape: bf16[16,4], index: 1, kind: input, shape index: {}]   ;;  %s1599_s2 = inlined_call_operand.hbm [shape: f32[9,16,256], index: 2, kind: input, shape index: {}]   ;;  %s1600_s3 = inlined_call_operand.vmem [shape: bf16[4,8], index: 3, kind: input, shape index: {}]   ;;  %s1601_s4 = inlined_call_operand.vmem [shape: f32[2,512], index: 4, kind: input, shape index: {}]   ;;  %s1602_s5 = inlined_call_operand.hbm [shape: f32[2,4,256], index: 5, kind: output, shape index: {}]  }
   0x1   :  { %12 = vsyncpa [#allocation4 + $0x1], 0 }
   0x2   :  { %13 = vsyncpa [#allocation7], 0 }
   0x3   :  { %14 = vsyncpa [#allocation5], 0 }
   0x4   :  { %16 = vsyncpa [#allocation5 + $0x1], 0  ;;  %s1179_s18 = smov 0   ;;  %s1181_s19 = smov 0  }
   0x5   :  { %s1183_s20 = smov 0   ;;  %s1185_s21 = smov 0  }
   0x6 LB: > { %s1200_s22 = sadd.s32 4294967295, %s1132_s21   ;;  %s901_s23 = sadd.s32 4294967294, %s1132_s21   ;;  %s1132_s21 = sphi %s1185_s21, %s1622_s21   ;;  %s1128_s20 = sphi %s1183_s20, %s1621_s20   ;;  %s1124_s19 = sphi %s1181_s19, %s1620_s19   ;;  %s1120_s18 = sphi %s1179_s18, %s1619_s18  }
   0x7   : > { %p42_p0 = scmp.ne.s32.totalorder %s1124_s19, %s1120_s18  ;;  %p1603_p1 = scmp.eq.s32.totalorder %s1200_s22, 0 }
   0x8   : > { %p156_p3 = scmp.eq.s32.totalorder %s901_s23, 1  ;;  %p902_p5 = scmp.ge.s32.totalorder %s1132_s21, 1 }
   0x9   : > { %p1209_p4 = por %p1603_p1, %p42_p0  ;;  %p163_p7 = scmp.lt.s32.totalorder %s1132_s21, 3 }
   0xa   : > { %p1214_p6 = por %p156_p3, %p42_p0  ;;  %s1134_s27 = smov [#allocation6]  }
   0xb   : > { %s1606_s24 = scalar_select %p1209_p4, 1, 0 }
   0xc   : > { %s1607_s25 = scalar_select %p1214_p6, 1, 0 }
   0xd   : > { %p1219_p8 = pnand %p902_p5, %p163_p7  ;;  %s178_s28 = sshll.u32 %s1134_s27, 4  ;;  %s1223_s28 = int_to_ptr.vmem [resolvable:$true] %s178_s28 }
   0xe   : > { %s1235_s30 = sadd.s32 1, %s1132_s21   ;;  %s29_s6 = sadd.s32 1, %s1128_s20 }
   0xf   : > { %s1608_s26 = scalar_select %p1219_p8, 1, 0 }
  0x10   : > { %p932_p9 = pneg %p1219_p8  ;;  %s26_s7 = ssub.s32 %s1132_s21, %s1235_s30 }
  0x11   : > { %s1004_s10 = scalar_lea.hbm %s1599_s2, 4608 }
  0x12   : > { %p1230_p11 = pnand %p932_p9, %p1603_p1  ;;  %p1005_p12 = scmp.ne.s32.totalorder %s1599_s2, %s1004_s10 }
  0x13   : > { %p1011_p5 = scmp.lt.u32.totalorder %s1004_s10, %s1599_s2 }
  0x14   : > { %p1006_p13 = pneg %p1230_p11 }
  0x16   : > { %p1007_p0 = pnand %p1006_p13, %p1005_p12 }
  0x18   : > { %p1008_p3 = pneg %p1007_p0 }
  0x1a   : > { %p1013_p7 = pnand %p1011_p5, %p1008_p3 }
  0x1c   : > { %1016 = shalt.err (!%p1013_p7)
}
  0x1d   : > { %s1017_s15 = scalar_lea.vmem %s1223_s28, 4608  ;;  %p1025_p2 = scmp.lt.s32.totalorder %s1223_s28, %s1223_s28 }
  0x1e   : > { %p1018_p9 = scmp.ne.s32.totalorder %s1223_s28, %s1017_s15  ;;  %p1026_p6 = scmp.lt.s32.totalorder %s1017_s15, %s1017_s15 }
  0x20   : > { %p1020_p10 = pnand %p1018_p9, %p1006_p13  ;;  %p1027_p4 = por %p1026_p6, %p1025_p2 }
  0x22   : > { %p1021_p1 = pneg %p1020_p10 }
  0x24   : > { %p1028_p8 = pnand %p1027_p4, %p1021_p1 }
  0x26   : > { %1031 = shalt.err (!%p1028_p8)
}
  0x27   : > { %s1135_s16 = smov 256   ;;  %s1136_s17 = smov 16  }
  0x28   : > { %935 = dma.hbm_to_vmem [thread:$0]  (!%p1230_p11), %s1599_s2, 4608, %s1223_s28, [#allocation7], %s1135_s16, %s1135_s16, %s1136_s17  }
  0x29   : > { %p27_p2 = scmp.eq.s32.totalorder %s26_s7, 0  ;;  %p36_p1 = scmp.ne.s32.totalorder %s1128_s20, %s1124_s19 }
  0x2a   : > { %p37_p4 = scmp.eq.s32.totalorder %s1132_s21, 0  ;;  %p945_p6 = scmp.lt.s32.totalorder %s1132_s21, 2 }
  0x2b   : > { %s1266_s8 = scalar_select %p27_p2, %s1128_s20, %s29_s6  }
  0x2c   : > { %p38_p8 = por %p37_p4, %p36_p1  ;;  %p1610_p10 = scmp.eq.s32.totalorder %s1200_s22, 1 }
  0x2d   : > { %s198_s10 = sand.u32 1, %s1128_s20   ;;  %s922_s11 = sshll.u32 %s1132_s21, 7 }
  0x2e   : > { %p1270_p12 = por %p1610_p10, %p36_p1  ;;  %s905_s12 = sshll.u32 %s198_s10, 3 }
  0x2f   : > { %s1279_s14 = scalar_lea.hbm %s1597_s0, %s922_s11  ;;  %s202_s28 = scalar_lea.vmem [#allocation3], %s905_s12 }
  0x30   : > { %s210_s6 = sshll.u32 %s202_s28, 4  ;;  %p1281_p11 = pnand %p945_p6, %p38_p8  ;;  %s1285_s6 = int_to_ptr.vmem [resolvable:$true] %s210_s6 }
  0x31   : > { %s199_s15 = scalar_lea.sflag [#allocation4], %s198_s10  ;;  %s1032_s16 = scalar_lea.hbm %s1279_s14, 128 }
  0x32   : > { %p1033_p13 = scmp.ne.s32.totalorder %s1279_s14, %s1032_s16  ;;  %p1034_p0 = pneg %p1281_p11 }
  0x33   : > { %s1037_s27 = scalar_lea.hbm %s1597_s0, 256  ;;  %p1038_p7 = scmp.lt.u32.totalorder %s1279_s14, %s1597_s0 }
  0x34   : > { %p1035_p3 = pnand %p1034_p0, %p1033_p13  ;;  %p1039_p9 = scmp.lt.u32.totalorder %s1037_s27, %s1032_s16 }
  0x35   : > { %p1041_p1 = scmp.lt.u32.totalorder %s1032_s16, %s1279_s14 }
  0x36   : > { %p1036_p5 = pneg %p1035_p3  ;;  %p1040_p2 = por %p1039_p9, %p1038_p7 }
  0x38   : > { %p1042_p4 = por %p1041_p1, %p1040_p2 }
  0x3a   : > { %p1043_p6 = pnand %p1042_p4, %p1036_p5 }
  0x3c   : > { %1046 = shalt.err (!%p1043_p6)
}
  0x3d   : > { %s1047_s10 = scalar_lea.vmem %s1285_s6, 128  ;;  %s1137_s29 = smov [#allocation3]  }
  0x3e   : > { %p1048_p8 = scmp.ne.s32.totalorder %s1285_s6, %s1047_s10  ;;  %s1052_s13 = sshll.u32 %s1137_s29, 4  ;;  %s1053_s13 = int_to_ptr.vmem [resolvable:$false] %s1052_s13 }
  0x3f   : > { %s1054_s28 = scalar_lea.vmem %s1053_s13, 256  ;;  %p1055_p3 = scmp.lt.s32.totalorder %s1285_s6, %s1053_s13 }
  0x40   : > { %p1050_p10 = pnand %p1048_p8, %p1034_p0  ;;  %p1056_p7 = scmp.lt.s32.totalorder %s1054_s28, %s1047_s10 }
  0x42   : > { %p1051_p13 = pneg %p1050_p10  ;;  %p1057_p9 = por %p1056_p7, %p1055_p3 }
  0x44   : > { %p1058_p2 = pnand %p1057_p9, %p1051_p13 }
  0x46   : > { %1061 = shalt.err (!%p1058_p2)
}
  0x47   : > { %939 = dma.hbm_to_vmem [thread:$0]  (!%p1281_p11), %s1279_s14, 128, %s1285_s6, %s199_s15  }
  0x48   : > { %p1613_p5 = scmp.ne.s32.totalorder %s1608_s26, 0 }
  0x49   : > { %s1315_s16 = sand.u32 (!%p1613_p5), 1, %s1124_s19   ;;  %p1614_p0 = scmp.ne.s32.totalorder (!%p1613_p5), %s1606_s24, 0 }
  0x4a   : > { %219 = sbr.rel (%p1613_p5) target bundleno = 729 (0x2d9), region = 40  ;;  %s909_s17 = sshll.u32 (!%p1613_p5), %s1315_s16, 3 }
  0x4b   : > { %s222_s23 = scalar_lea.sflag (!%p1613_p5), [#allocation4], %s1315_s16  ;;  %s225_s27 = scalar_lea.vmem (!%p1613_p5), [#allocation3], %s909_s17 }
  0x51   : > { %1107 = dma.done.wait (%p1614_p0), %s222_s23, 128  }
  0x52   : > { %1109 = vsyncadd (%p1614_p0), %s222_s23, 4294967168  ;;  %p1615_p11 = scmp.eq.s32.totalorder %s1200_s22, 0 }
  0x54   : > { %1111 = dma.done.wait (%p1615_p11), [#allocation7], 4608   ;;  %p1616_p1 = pmov %p1615_p11 }
  0x55   : > { %v1138_v0 = vmov 0   ;;  %v342_v1 = vlaneseq  ;;  %v1139_v2 = vmov 0.0   ;;  %s1140_s26 = smov 112   ;;  %s1141_s14 = smov 16   ;;  %vm274_vm0 = vcmask 1041408   ;;  %v257_v7 = vld [vmem:[%s225_s27] sm:$0xff] }
  0x56   : > { %1113 = vsyncadd (%p1616_p1), [#allocation7], 4294962688  ;;  %313 = vmatprep.mubr.bf16.mxu0 %v1138_v0  ;;  %792 = vmatprep.mubr.bf16.mxu1 %v1138_v0  ;;  %v259_v9 = vcombine.high %v257_v7, %v257_v7  ;;  %v261_v10 = vpack.c.bf16 %v257_v7, %v257_v7  ;;  %v340_v11 = vld [vmem:[%s1601_s4] sm:$0xff]  ;;  %vm270_vm1 = vcmask 31744   ;;  %s1142_s11 = smov 17   ;;  %s1143_s12 = smov 1  }
  0x57   : > { %672 = vrot.lane.b32.xlu0 %v1139_v2, %s1140_s26  ;;  %v1331_v3 = vshrl.u32 %v342_v1, 7  ;;  %994 = vrot.lane.b32.xlu1 %v1139_v2, %s1141_s14  ;;  %v999_v21 = vld [vmem:[%s1598_s1] sm:$0xff]   ;;  %s1144_s10 = smov 15   ;;  %s1145_s29 = smov 113   ;;  %vm488_vm2 = vcmask 138240   ;;  %vm523_vm3 = vcmask 130048  }
  0x58   : > { %v262_v15 = vpack.c.bf16 %v259_v9, %v259_v9  ;;  %v276_v16 = vsel %vm274_vm0, %v261_v10, 0  ;;  %s1146_s13 = smov 127   ;;  %s1147_s28 = smov 111   ;;  %vm558_vm4 = vcmask 121856   ;;  %vm587_vm5 = vcmask 7168  }
  0x59   : > { %v1336_v4 = vsub.s32 0, %v1331_v3  ;;  %v1339_v5 = vsub.s32 1, %v1331_v3  ;;  %v356_v6 = vsub.s32 6, %v1331_v3  ;;  %v400_v8 = vsub.s32 7, %v1331_v3 }
  0x5a   : > { %913 = vmatprep.subr.msk.bf16.mxu0 %vm274_vm0, %v262_v15  ;;  %v348_v27 = vsub.s32 2, %v1331_v3  ;;  %v392_v28 = vsub.s32 3, %v1331_v3  ;;  %v396_v38 = vsub.s32 5, %v1331_v3  ;;  %v352_v41 = vsub.s32 4, %v1331_v3 }
  0x5b   : > { %v345_v12 = vrot.slane %v340_v11, %v1336_v4  ;;  %v389_v13 = vrot.slane %v340_v11, %v1339_v5  ;;  %v357_v14 = vrot.slane %v340_v11, %v356_v6  ;;  %v401_v19 = vrot.slane %v340_v11, %v400_v8  ;;  %282 = vmatpush1.bf16.msra.mxu0 %v276_v16  ;;  %v430_v8 = vld [vmem:[#allocation6] sm:$0xff] }
  0x5c   : > { %v349_v29 = vrot.slane %v340_v11, %v348_v27  ;;  %v393_v31 = vrot.slane %v340_v11, %v392_v28  ;;  %v397_v40 = vrot.slane %v340_v11, %v396_v38  ;;  %v353_v43 = vrot.slane %v340_v11, %v352_v41  ;;  %v438_v28 = vld [vmem:[#allocation6 + $0x40] sm:$0xff] }
  0x5d   : > { %v365_v17 = vrot.slane %v345_v12, %v1336_v4  ;;  %v409_v18 = vrot.slane %v389_v13, %v1339_v5  ;;  %v377_v20 = vrot.slane %v357_v14, %v1336_v4  ;;  %v421_v24 = vrot.slane %v401_v19, %v1339_v5  ;;  %v446_v12 = vld [vmem:[#allocation6 + $0x80] sm:$0xff] }
  0x5e   : > { %914 = vmatmul.mubr.msk.bf16.vlgmr.msra.gmra.mrb[0].mxu0 %vm270_vm1, %v999_v21  ;;  %v369_v35 = vrot.slane %v349_v29, %v1336_v4  ;;  %v413_v36 = vrot.slane %v393_v31, %v1339_v5  ;;  %v417_v42 = vrot.slane %v397_v40, %v1339_v5  ;;  %v373_v45 = vrot.slane %v353_v43, %v1336_v4 }
  0x5f   : > { %v378_v22 = vmul.f32 0.0, %v365_v17  ;;  %v422_v23 = vmul.f32 0.0, %v409_v18  ;;  %v381_v25 = vmul.f32 0.0, %v377_v20  ;;  %v1358_v26 = vmul.f32 0.0, %v421_v24  ;;  %v434_v18 = vld [vmem:[#allocation6 + $0x20] sm:$0xff] }
  0x60   : > { %vm649_vm6 = vcmask 924672   ;;  %vm618_vm7 = vcmask 1039360   ;;  %vm680_vm8 = vcmask 916480   ;;  %vm709_vm9 = vcmask 908288  }
  0x61   : > { %476 = vrot.lane.b32.xlu0 %v378_v22, %s1142_s11  ;;  %575 = vrot.lane.b32.xlu1 %v378_v22, %s1143_s12  ;;  %vm753_vm10 = vcmask 1043456   ;;  %vm749_vm11 = vcmask 64512  }
  0x65   : > { %546 = vrot.lane.b32.xlu0 %v422_v23, %s1144_s10  ;;  %641 = vrot.lane.b32.xlu1 %v381_v25, %s1145_s29 }
  0x69   : > { %610 = vrot.lane.b32.xlu0 %v1358_v26, %s1146_s13  ;;  %701 = vrot.lane.b32.xlu1 %v1358_v26, %s1147_s28 }
  0x6d   : > { %482 = vrot.lane.b32.xlu0 %v378_v22, %s1142_s11  ;;  %552 = vrot.lane.b32.xlu1 %v422_v23, %s1144_s10  ;;  %v447_v23 = vld [vmem:[#allocation6 + $0x88] sm:$0xff] }
  0x71   : > { %581 = vrot.lane.b32.xlu0 %v378_v22, %s1143_s12  ;;  %616 = vrot.lane.b32.xlu1 %v1358_v26, %s1146_s13  ;;  %v431_v22 = vld [vmem:[#allocation6 + $0x8] sm:$0xff] }
  0x75   : > { %647 = vrot.lane.b32.xlu0 %v381_v25, %s1145_s29 }
  0xc9   : > { %v1439_v51 = vpop.permute.xlu0 %672  ;;  %v1441_v53 = vpop.permute.xlu1 %994 }
  0xca   : > { %v996_v14 = vunpack.i.l.bf16 %v1441_v53 }
  0xd3   : > { %v477_v52 = vpop.permute.xlu0 %476  ;;  %v576_v55 = vpop.permute.xlu1 %575 }
  0xd7   : > { %v547_v54 = vpop.permute.xlu0 %546  ;;  %v1445_v57 = vpop.permute.xlu1 %641 }
  0xdb   : > { %v1443_v56 = vpop.permute.xlu0 %610  ;;  %v1449_v59 = vpop.permute.xlu1 %701 }
  0xdf   : > { %v1447_v58 = vpop.permute.xlu0 %482  ;;  %v1453_v61 = vpop.permute.xlu1 %552 }
  0xe3   : > { %v1451_v60 = vpop.permute.xlu0 %581  ;;  %v1457_v63 = vpop.permute.xlu1 %616 }
  0xe7   : > { %v1455_v62 = vpop.permute.xlu0 %647 }
 0x131   : > { %v1373_v30 = vpop.f32.mrb[0].mxu0 }
 0x132   : > { %513 = vrot.lane.b32.xlu0 %v1373_v30, %s1141_s14  ;;  %v1377_v32 = vpop.f32.mrb[1].mxu0  ;;  %v379_v37 = vmul.f32 %v369_v35, %v1373_v30  ;;  %v423_v39 = vmul.f32 %v413_v36, %v1373_v30  ;;  %v466_v16 = vmul.f32 %v446_v12, %v1373_v30 }
 0x133   : > { %515 = vrot.lane.b32.xlu1 %v1377_v32, %s1141_s14  ;;  %v1381_v33 = vpop.f32.mrb[2].mxu0  ;;  %v424_v44 = vmul.f32 %v417_v42, %v1377_v32  ;;  %v380_v46 = vmul.f32 %v373_v45, %v1377_v32 }
 0x134   : > { %v1383_v34 = vpop.f32.mrb[3].mxu0  ;;  %v427_v47 = vmul.f32 %v413_v36, %v1381_v33  ;;  %v383_v48 = vmul.f32 %v369_v35, %v1381_v33  ;;  %v467_v35 = vmul.f32 %v447_v23, %v1377_v32 }
 0x135   : > { %v384_v49 = vmul.f32 %v373_v45, %v1383_v34  ;;  %v428_v50 = vmul.f32 %v417_v42, %v1383_v34 }
 0x136   : > { %668 = vrot.lane.b32.xlu0 %v1373_v30, %s1140_s26 }
 0x137   : > { %670 = vrot.lane.b32.xlu1 %v1377_v32, %s1140_s26 }
 0x13a   : > { %478 = vrot.lane.b32.xlu0 %v379_v37, %s1142_s11 }
 0x13b   : > { %548 = vrot.lane.b32.xlu1 %v423_v39, %s1144_s10 }
 0x13e   : > { %577 = vrot.lane.b32.xlu0 %v379_v37, %s1143_s12 }
 0x13f   : > { %637 = vrot.lane.b32.xlu1 %v379_v37, %s1145_s29  ;;  %v439_v37 = vld [vmem:[#allocation6 + $0x48] sm:$0xff] }
 0x142   : > { %606 = vrot.lane.b32.xlu0 %v423_v39, %s1146_s13 }
 0x143   : > { %697 = vrot.lane.b32.xlu1 %v423_v39, %s1147_s28 }
 0x146   : > { %550 = vrot.lane.b32.xlu0 %v424_v44, %s1144_s10 }
 0x147   : > { %519 = vrot.lane.b32.xlu1 %v1381_v33, %s1141_s14 }
 0x14a   : > { %639 = vrot.lane.b32.xlu0 %v380_v46, %s1145_s29 }
 0x14b   : > { %480 = vrot.lane.b32.xlu1 %v380_v46, %s1142_s11 }
 0x14e   : > { %699 = vrot.lane.b32.xlu0 %v424_v44, %s1147_s28 }
 0x14f   : > { %579 = vrot.lane.b32.xlu1 %v380_v46, %s1143_s12  ;;  %v443_v46 = vld [vmem:[#allocation6 + $0x68] sm:$0xff] }
 0x152   : > { %521 = vrot.lane.b32.xlu0 %v1383_v34, %s1141_s14  ;;  %s255_s14 = scalar_lea.vmem [#allocation8], %s909_s17  ;;  %s1148_s17 = smov [#allocation8]  }
 0x153   : > { %608 = vrot.lane.b32.xlu1 %v424_v44, %s1146_s13  ;;  %v442_v44 = vld [vmem:[#allocation6 + $0x60] sm:$0xff]  ;;  %s821_s24 = sshll.u32 %s255_s14, 4  ;;  %s1555_s24 = int_to_ptr.vmem [resolvable:$true] %s821_s24 }
 0x156   : > { %676 = vrot.lane.b32.xlu0 %v1383_v34, %s1140_s26 }
 0x157   : > { %674 = vrot.lane.b32.xlu1 %v1381_v33, %s1140_s26 }
 0x15a   : > { %554 = vrot.lane.b32.xlu0 %v427_v47, %s1144_s10 }
 0x15b   : > { %484 = vrot.lane.b32.xlu1 %v383_v48, %s1142_s11 }
 0x15e   : > { %643 = vrot.lane.b32.xlu0 %v383_v48, %s1145_s29 }
 0x15f   : > { %583 = vrot.lane.b32.xlu1 %v383_v48, %s1143_s12 }
 0x162   : > { %486 = vrot.lane.b32.xlu0 %v384_v49, %s1142_s11  ;;  %s1062_s11 = scalar_lea.vmem %s1555_s24, 128 }
 0x163   : > { %612 = vrot.lane.b32.xlu1 %v427_v47, %s1146_s13  ;;  %p1063_p4 = scmp.ne.s32.totalorder %s1555_s24, %s1062_s11 }
 0x165   : > { %p1064_p6 = pnand %p1063_p4, %p1270_p12 }
 0x166   : > { %585 = vrot.lane.b32.xlu0 %v384_v49, %s1143_s12  ;;  %s1066_s12 = sshll.u32 %s1148_s17, 4  ;;  %s1067_s12 = int_to_ptr.vmem [resolvable:$false] %s1066_s12 }
 0x167   : > { %556 = vrot.lane.b32.xlu1 %v428_v50, %s1144_s10  ;;  %p1065_p8 = pneg %p1064_p6  ;;  %s1068_s10 = scalar_lea.vmem %s1067_s12, 256 }
 0x168   : > { %p1069_p10 = scmp.lt.s32.totalorder %s1555_s24, %s1067_s12  ;;  %p1070_p13 = scmp.lt.s32.totalorder %s1068_s10, %s1062_s11 }
 0x16a   : > { %614 = vrot.lane.b32.xlu0 %v428_v50, %s1146_s13  ;;  %p1071_p3 = por %p1070_p13, %p1069_p10 }
 0x16b   : > { %678 = vrot.lane.b32.xlu1 %v1139_v2, %s1140_s26  ;;  %s923_s26 = sshll.u32 %s1200_s22, 7  ;;  %s807_s22 = scalar_lea.sflag [#allocation5], %s1315_s16 }
 0x16c   : > { %s1553_s15 = scalar_lea.hbm %s1602_s5, %s923_s26  ;;  %p1072_p7 = pnand %p1071_p3, %p1065_p8 }
 0x16e   : > { %703 = vrot.lane.b32.xlu0 %v427_v47, %s1147_s28 }
 0x16f   : > { %645 = vrot.lane.b32.xlu1 %v384_v49, %s1145_s29 }
 0x172   : > { %707 = vrot.lane.b32.xlu0 %v1358_v26, %s1147_s28  ;;  %v435_v26 = vld [vmem:[#allocation6 + $0x28] sm:$0xff] }
 0x173   : > { %705 = vrot.lane.b32.xlu1 %v428_v50, %s1147_s28 }
 0x1a4   : > { %v514_v0 = vpop.permute.xlu0 %513 }
 0x1a5   : > { %v516_v1 = vpop.permute.xlu1 %515  ;;  %v524_v19 = vsel %vm523_vm3, %v996_v14, %v514_v0 }
 0x1a6   : > { %v532_v24 = vmul.f32 %v524_v19, %v434_v18  ;;  %v525_v27 = vsel %vm523_vm3, %v514_v0, %v516_v1  ;;  %v458_v19 = vld [vmem:[#allocation6 + $0xe0] sm:$0xff] }
 0x1a7   : > { %v533_v40 = vmul.f32 %v525_v27, %v435_v26  ;;  %v463_v26 = vld [vmem:[#allocation6 + $0x108] sm:$0xff] }
 0x1a8   : > { %v1459_v2 = vpop.permute.xlu0 %668 }
 0x1a9   : > { %v1461_v3 = vpop.permute.xlu1 %670 }
 0x1ac   : > { %v479_v4 = vpop.permute.xlu0 %478 }
 0x1ad   : > { %v549_v5 = vpop.permute.xlu1 %548  ;;  %v489_v9 = vsel %vm488_vm2, %v477_v52, %v479_v4  ;;  %v450_v52 = vld [vmem:[#allocation6 + $0xa0] sm:$0xff] }
 0x1ae   : > { %v497_v13 = vmul.f32 %v489_v9, %v430_v8  ;;  %v559_v29 = vsel %vm558_vm4, %v547_v54, %v549_v5  ;;  %v451_v54 = vld [vmem:[#allocation6 + $0xa8] sm:$0xff]  ;;  %v454_v8 = vld [vmem:[#allocation6 + $0xc0] sm:$0xff] }
 0x1af   : > { %v567_v41 = vmul.f32 %v559_v29, %v438_v28 }
 0x1b0   : > { %v578_v6 = vpop.permute.xlu0 %577  ;;  %v501_v20 = vadd.f32 %v497_v13, %v466_v16 }
 0x1b1   : > { %v638_v7 = vpop.permute.xlu1 %637  ;;  %v588_v45 = vsel %vm587_vm5, %v576_v55, %v578_v6  ;;  %v455_v55 = vld [vmem:[#allocation6 + $0xc8] sm:$0xff] }
 0x1b2   : > { %v536_v31 = vadd.f32 %v532_v24, %v501_v20  ;;  %v596_v0 = vmul.f32 %v588_v45, %v442_v44  ;;  %v459_v20 = vld [vmem:[#allocation6 + $0xe8] sm:$0xff] }
 0x1b4   : > { %v607_v10 = vpop.permute.xlu0 %606  ;;  %v571_v48 = vadd.f32 %v567_v41, %v536_v31 }
 0x1b5   : > { %v1464_v11 = vpop.permute.xlu1 %697 }
 0x1b6   : > { %v600_v14 = vadd.f32 %v596_v0, %v571_v48  ;;  %v444_v0 = vld [vmem:[#allocation6 + $0x70] sm:$0xff] }
 0x1b8   : > { %v551_v15 = vpop.permute.xlu0 %550 }
 0x1b9   : > { %v1468_v17 = vpop.permute.xlu1 %519  ;;  %v560_v38 = vsel %vm558_vm4, %v549_v5, %v551_v15 }
 0x1ba   : > { %v568_v49 = vmul.f32 %v560_v38, %v439_v37 }
 0x1bc   : > { %v640_v21 = vpop.permute.xlu0 %639 }
 0x1bd   : > { %v481_v25 = vpop.permute.xlu1 %480  ;;  %v650_v9 = vsel %vm649_vm6, %v638_v7, %v640_v21  ;;  %v682_v7 = vsel %vm680_vm8, %v1461_v3, %v1439_v51 }
 0x1be   : > { %v490_v30 = vsel %vm488_vm2, %v479_v4, %v481_v25  ;;  %v462_v25 = vld [vmem:[#allocation6 + $0x100] sm:$0xff]  ;;  %v690_v29 = vmul.f32 %v682_v7, %v459_v20 }
 0x1bf   : > { %v498_v36 = vmul.f32 %v490_v30, %v431_v22  ;;  %v681_v22 = vsel %vm680_vm8, %v1459_v2, %v1461_v3  ;;  %v997_v3 = vunpack.i.h.bf16 %v1441_v53 }
 0x1c0   : > { %v700_v39 = vpop.permute.xlu0 %699  ;;  %v689_v28 = vmul.f32 %v681_v22, %v458_v19 }
 0x1c1   : > { %v502_v42 = vadd.f32 %v498_v36, %v467_v35  ;;  %v580_v43 = vpop.permute.xlu1 %579  ;;  %v710_v27 = vsel %vm709_vm9, %v1464_v11, %v700_v39  ;;  %v711_v2 = vsel %vm709_vm9, %v700_v39, %v1449_v59  ;;  %v432_v35 = vld [vmem:[#allocation6 + $0x10] sm:$0xff]  ;;  %v526_v11 = vsel %vm523_vm3, %v997_v3, %v1468_v17 }
 0x1c2   : > { %v589_v47 = vsel %vm587_vm5, %v578_v6, %v580_v43  ;;  %v651_v6 = vsel %vm649_vm6, %v640_v21, %v1445_v57  ;;  %v448_v36 = vld [vmem:[#allocation6 + $0x90] sm:$0xff]  ;;  %v718_v37 = vmul.f32 %v710_v27, %v462_v25  ;;  %v719_v38 = vmul.f32 %v711_v2, %v463_v26  ;;  %v445_v26 = vld [vmem:[#allocation6 + $0x78] sm:$0xff] }
 0x1c3   : > { %v537_v50 = vadd.f32 %v533_v40, %v502_v42  ;;  %v597_v4 = vmul.f32 %v589_v47, %v443_v46  ;;  %v659_v21 = vmul.f32 %v651_v6, %v455_v55  ;;  %v436_v43 = vld [vmem:[#allocation6 + $0x30] sm:$0xff]  ;;  %v468_v53 = vmul.f32 %v448_v36, %v1381_v33 }
 0x1c4   : > { %v1478_v32 = vpop.permute.xlu0 %521  ;;  %v440_v46 = vld [vmem:[#allocation6 + $0x50] sm:$0xff] }
 0x1c5   : > { %v572_v1 = vadd.f32 %v568_v49, %v537_v50  ;;  %v609_v5 = vpop.permute.xlu1 %608  ;;  %v534_v49 = vmul.f32 %v526_v11, %v436_v43 }
 0x1c6   : > { %v619_v12 = vsel %vm618_vm7, %v607_v10, %v609_v5  ;;  %v620_v13 = vsel %vm618_vm7, %v609_v5, %v1443_v56  ;;  %v658_v10 = vmul.f32 %v650_v9, %v454_v8  ;;  %v433_v8 = vld [vmem:[#allocation6 + $0x18] sm:$0xff] }
 0x1c7   : > { %v601_v15 = vadd.f32 %v597_v4, %v572_v1  ;;  %v627_v16 = vmul.f32 %v619_v12, %v450_v52  ;;  %v628_v18 = vmul.f32 %v620_v13, %v451_v54  ;;  %v449_v4 = vld [vmem:[#allocation6 + $0x98] sm:$0xff] }
 0x1c8   : > { %v1492_v57 = vpop.permute.xlu0 %676  ;;  %v437_v12 = vld [vmem:[#allocation6 + $0x38] sm:$0xff] }
 0x1c9   : > { %v631_v23 = vadd.f32 %v627_v16, %v600_v14  ;;  %v632_v56 = vadd.f32 %v628_v18, %v601_v15  ;;  %v1494_v24 = vpop.permute.xlu1 %674  ;;  %v469_v18 = vmul.f32 %v449_v4, %v1383_v34  ;;  %v465_v4 = vld [vmem:[#allocation6 + $0x118] sm:$0xff] }
 0x1cb   : > { %v662_v30 = vadd.f32 %v658_v10, %v631_v23  ;;  %v663_v51 = vadd.f32 %v659_v21, %v632_v56  ;;  %v441_v21 = vld [vmem:[#allocation6 + $0x58] sm:$0xff] }
 0x1cc   : > { %v555_v31 = vpop.permute.xlu0 %554 }
 0x1cd   : > { %v693_v40 = vadd.f32 %v689_v28, %v662_v30  ;;  %v694_v41 = vadd.f32 %v690_v29, %v663_v51  ;;  %v485_v42 = vpop.permute.xlu1 %484  ;;  %v561_v47 = vsel %vm558_vm4, %v1453_v61, %v555_v31  ;;  %v527_v61 = vsel %vm523_vm3, %v1468_v17, %v1478_v32  ;;  %v452_v30 = vld [vmem:[#allocation6 + $0xb0] sm:$0xff]  ;;  %v453_v51 = vld [vmem:[#allocation6 + $0xb8] sm:$0xff] }
 0x1ce   : > { %v491_v59 = vsel %vm488_vm2, %v1447_v58, %v485_v42  ;;  %v569_v5 = vmul.f32 %v561_v47, %v440_v46  ;;  %v535_v17 = vmul.f32 %v527_v61, %v437_v12  ;;  %v683_v46 = vsel %vm680_vm8, %v1494_v24, %v1492_v57  ;;  %v461_v47 = vld [vmem:[#allocation6 + $0xf8] sm:$0xff] }
 0x1cf   : > { %v1505_v39 = vadd.f32 %v718_v37, %v693_v40  ;;  %v1507_v44 = vadd.f32 %v719_v38, %v694_v41  ;;  %v499_v45 = vmul.f32 %v491_v59, %v432_v35  ;;  %v457_v59 = vld [vmem:[#allocation6 + $0xd8] sm:$0xff] }
 0x1d0   : > { %v644_v48 = vpop.permute.xlu0 %643 }
 0x1d1   : > { %v503_v50 = vadd.f32 %v499_v45, %v468_v53  ;;  %v584_v52 = vpop.permute.xlu1 %583  ;;  %v729_v54 = vmul.f32 0.044715, %v1507_v44  ;;  %v728_v1 = vmul.f32 0.044715, %v1505_v39  ;;  %v460_v45 = vld [vmem:[#allocation6 + $0xf0] sm:$0xff] }
 0x1d2   : > { %v590_v58 = vsel %vm587_vm5, %v1451_v60, %v584_v52 }
 0x1d3   : > { %v538_v33 = vadd.f32 %v534_v49, %v503_v50  ;;  %v731_v55 = vmul.f32 %v729_v54, %v1507_v44  ;;  %v730_v6 = vmul.f32 %v728_v1, %v1505_v39  ;;  %v598_v14 = vmul.f32 %v590_v58, %v444_v0  ;;  %v464_v1 = vld [vmem:[#allocation6 + $0x110] sm:$0xff] }
 0x1d4   : > { %v487_v9 = vpop.permute.xlu0 %486 }
 0x1d5   : > { %v573_v13 = vadd.f32 %v569_v5, %v538_v33  ;;  %v492_v60 = vsel %vm488_vm2, %v485_v42, %v487_v9  ;;  %v613_v15 = vpop.permute.xlu1 %612  ;;  %v733_v16 = vmul.f32 %v731_v55, %v1507_v44  ;;  %v732_v20 = vmul.f32 %v730_v6, %v1505_v39 }
 0x1d6   : > { %v500_v19 = vmul.f32 %v492_v60, %v433_v8  ;;  %v691_v8 = vmul.f32 %v683_v46, %v460_v45 }
 0x1d7   : > { %v602_v22 = vadd.f32 %v598_v14, %v573_v13  ;;  %v735_v7 = vadd.f32 %v733_v16, %v1507_v44  ;;  %v734_v23 = vadd.f32 %v732_v20, %v1505_v39 }
 0x1d8   : > { %v504_v32 = vadd.f32 %v500_v19, %v469_v18  ;;  %v586_v10 = vpop.permute.xlu0 %585  ;;  %v726_v18 = vmul.f32 0.5, %v1505_v39 }
 0x1d9   : > { %v557_v56 = vpop.permute.xlu1 %556  ;;  %v737_v25 = vmul.f32 0.7978846, %v735_v7  ;;  %v591_v27 = vsel %vm587_vm5, %v584_v52, %v586_v10  ;;  %v736_v28 = vmul.f32 0.7978846, %v734_v23  ;;  %v746_v23 = vld [vmem:[%s1600_s3] sm:$0x3] }
 0x1da   : > { %v539_v2 = vadd.f32 %v535_v17, %v504_v32  ;;  %v562_v34 = vsel %vm558_vm4, %v555_v31, %v557_v56  ;;  %v599_v35 = vmul.f32 %v591_v27, %v445_v26  ;;  %v456_v31 = vld [vmem:[#allocation6 + $0xd0] sm:$0xff] }
 0x1db   : > { %v570_v29 = vmul.f32 %v562_v34, %v441_v21  ;;  %1000 = vtanh.f32 %v737_v25 }
 0x1dc   : > { %v615_v3 = vpop.permute.xlu0 %614  ;;  %1002 = vtanh.f32 %v736_v28 }
 0x1dd   : > { %v574_v36 = vadd.f32 %v570_v29, %v539_v2  ;;  %v621_v37 = vsel %vm618_vm7, %v613_v15, %v615_v3  ;;  %v622_v38 = vsel %vm618_vm7, %v615_v3, %v1457_v63  ;;  %v679_v40 = vpop.permute.xlu1 %678 }
 0x1de   : > { %v629_v42 = vmul.f32 %v621_v37, %v452_v30  ;;  %v630_v43 = vmul.f32 %v622_v38, %v453_v51  ;;  %v684_v49 = vsel %vm680_vm8, %v1492_v57, %v679_v40 }
 0x1df   : > { %v603_v41 = vadd.f32 %v599_v35, %v574_v36  ;;  %v692_v55 = vmul.f32 %v684_v49, %v461_v47 }
 0x1e0   : > { %v704_v11 = vpop.permute.xlu0 %703  ;;  %v633_v52 = vadd.f32 %v629_v42, %v602_v22 }
 0x1e1   : > { %v646_v53 = vpop.permute.xlu1 %645  ;;  %v634_v54 = vadd.f32 %v630_v43, %v603_v41 }
 0x1e2   : > { %v652_v50 = vsel %vm649_vm6, %v644_v48, %v646_v53  ;;  %v653_v63 = vsel %vm649_vm6, %v646_v53, %v1455_v62  ;;  %v727_v62 = vmul.f32 0.5, %v1507_v44 }
 0x1e3   : > { %v660_v0 = vmul.f32 %v652_v50, %v456_v31  ;;  %v661_v58 = vmul.f32 %v653_v63, %v457_v59 }
 0x1e4   : > { %v708_v5 = vpop.permute.xlu0 %707 }
 0x1e5   : > { %v1001_v33 = vpop.eup %1000  ;;  %v664_v24 = vadd.f32 %v660_v0, %v633_v52  ;;  %v665_v61 = vadd.f32 %v661_v58, %v634_v54  ;;  %v706_v9 = vpop.permute.xlu1 %705 }
 0x1e6   : > { %v1003_v6 = vpop.eup %1002  ;;  %v712_v57 = vsel %vm709_vm9, %v704_v11, %v706_v9  ;;  %v713_v48 = vsel %vm709_vm9, %v706_v9, %v708_v5  ;;  %v741_v12 = vadd.f32 1.0, %v1001_v33 }
 0x1e7   : > { %v695_v13 = vadd.f32 %v691_v8, %v664_v24  ;;  %v720_v14 = vmul.f32 %v712_v57, %v464_v1  ;;  %v721_v60 = vmul.f32 %v713_v48, %v465_v4  ;;  %v696_v15 = vadd.f32 %v692_v55, %v665_v61 }
 0x1e8   : > { %v743_v16 = vmul.f32 %v741_v12, %v727_v62  ;;  %v740_v19 = vadd.f32 1.0, %v1003_v6 }
 0x1e9   : > { %v724_v20 = vadd.f32 %v720_v14, %v695_v13  ;;  %v725_v22 = vadd.f32 %v721_v60, %v696_v15 }
 0x1ea   : > { %v742_v7 = vmul.f32 %v740_v19, %v726_v18 }
 0x1eb   : > { %v745_v17 = vmul.f32 %v743_v16, %v725_v22 }
 0x1ec   : > { %v744_v32 = vmul.f32 %v742_v7, %v724_v20 }
 0x1ed   : > { %v748_v10 = vpack.c.bf16 %v745_v17, %v745_v17 }
 0x1ee   : > { %v747_v21 = vpack.c.bf16 %v744_v32, %v744_v32 }
 0x1ef   : > { %915 = vmatprep.subr.msk.bf16.mxu1 %vm753_vm10, %v748_v10 }
 0x1f0   : > { %v755_v44 = vsel %vm753_vm10, %v747_v21, 0 }
 0x1f1   : > { %761 = vmatpush1.bf16.msra.mxu1 %v755_v44 }
 0x1f4   : > { %916 = vmatmul.mubr.msk.bf16.vlgmr.msra.gmra.mrb[0].mxu1 %vm749_vm11, %v746_v23 }
 0x2c7   : > { %v794_v39 = vpop.f32.mrb[0].mxu1 }
 0x2c8   : > { %v796_v56 = vpop.f32.mrb[1].mxu1 }
 0x2c9   : > { %v803_v25 = vcombine.low %v794_v39, %v796_v56  ;;  %v798_v26 = vpop.f32.mrb[2].mxu1 }
 0x2ca   : > { %v799_v27 = vpop.f32.mrb[3].mxu1 }
 0x2cb   : > { %805 = vst [vmem:[%s255_s14] sm:$0xff] %v803_v25 }
 0x2cc   : > { %1075 = shalt.err (!%p1072_p7)
}
 0x2cd   : > { %s1076_s16 = scalar_lea.hbm %s1553_s15, 128  ;;  %s1080_s28 = scalar_lea.hbm %s1602_s5, 256 }
 0x2ce   : > { %p1077_p9 = scmp.ne.s32.totalorder %s1553_s15, %s1076_s16  ;;  %p1081_p0 = scmp.lt.u32.totalorder %s1553_s15, %s1602_s5 }
 0x2cf   : > { %p1082_p11 = scmp.lt.u32.totalorder %s1080_s28, %s1076_s16  ;;  %p1084_p4 = scmp.lt.u32.totalorder %s1076_s16, %s1553_s15 }
 0x2d0   : > { %p1078_p2 = pnand %p1077_p9, %p1270_p12 }
 0x2d1   : > { %p1083_p1 = por %p1082_p11, %p1081_p0 }
 0x2d2   : > { %p1079_p5 = pneg %p1078_p2 }
 0x2d3   : > { %p1085_p6 = por %p1084_p4, %p1083_p1 }
 0x2d5   : > { %p1086_p8 = pnand %p1085_p6, %p1079_p5 }
 0x2d7   : > { %1089 = shalt.err (!%p1086_p8)
}
 0x2d8   : > { %930 = dma.vmem_to_hbm [thread:$0]  (%p1270_p12), %s1555_s24, 128, %s1553_s15, %s807_s22  }
 0x2d9 PF: > { %s833_s26 = sand.u32 1, %s1120_s18   ;;  %p1617_p10 = scmp.ne.s32.totalorder %s1607_s25, 0 }
 0x2da   : > { %p1618_p13 = scmp.ge.s32.totalorder %s1132_s21, 2  ;;  %s834_s14 = scalar_lea.sflag [#allocation5], %s833_s26 }
 0x2dc   : > { %p941_p3 = pnand %p1618_p13, %p1617_p10 }
 0x2de   : > { %1115 = dma.done.wait (!%p941_p3), %s834_s14, 128  }
 0x2df   : > { %1117 = vsyncadd (!%p941_p3), %s834_s14, 4294967168  ;;  %p19_p7 = scmp.ge.s32.totalorder %s1235_s30, 4   ;;  %s1619_s18 = smov %s1124_s19 }
 0x2e0   : > { %s1620_s19 = smov %s1128_s20  ;;  %s1621_s20 = smov %s1266_s8 }
 0x2e1   : > { %s1622_s21 = smov %s1235_s30  ;;  %21 = sbr.rel (!%p19_p7) target bundleno = 6 (0x6), region = 89 }
 0x2e8   :  { %839 = vsyncpa [#allocation4], 1 }
 0x2e9   :  { %841 = vsyncpa [#allocation4 + $0x1], 1 }
 0x2ea   :  { %842 = vsyncpa [#allocation7], 1 }
 0x2eb   :  { %843 = vsyncpa [#allocation5], 1 }
 0x2ec   :  { %845 = vsyncpa [#allocation5 + $0x1], 1 }

</bundles_post_ra>
